<compile_context>
chip_gen: v6e
topology: v6e:2x2x1
jax: 0.10.0
libtpu: 0.0.40
codegen_flags: <defaults>
</compile_context>

<pallas_src>
import functools

import jax
import jax.numpy as jnp
import numpy as np
from jax.experimental import pallas as pl
from jax.experimental.pallas import tpu as pltpu


# ----------------------------- config -----------------------------------
B = 2               # batch
N = 8               # cards per example
MAX_SUIT_LEN = 13   # rank vocabulary size
NUM_SUITS = 4       # suit vocabulary size
D = 32              # CardModel output_dim
R_ROWS = MAX_SUIT_LEN + 1        # rank table rows (pos buffer, row 0 = padding slot)
S_ROWS = NUM_SUITS + 1           # suit table rows (row 0 = padding row, zeroed)
TOTAL_ROWS = R_ROWS + S_ROWS     # packed table rows
ROW_BLOCK = 256                  # rows per grid step for large batches (fills MXU M)


# ----------------------- parameter construction -------------------------
def get_pos_embed(num_pos, output_dim):
    """JAX port of the torch get_pos_embed buffer."""
    assert output_dim % 2 == 0
    pos_idx = jnp.arange(num_pos, dtype=jnp.float32)
    channel_idx = jnp.arange(output_dim // 2, dtype=jnp.float32)
    freq = 1.0 / (0.5 * num_pos ** (channel_idx / (output_dim // 2)))
    arg = pos_idx[:, None] * freq[None, :]
    return jnp.stack([jnp.cos(arg), jnp.sin(arg)], axis=-1).reshape(num_pos, output_dim)


def init_params(key):
    rank_table = get_pos_embed(R_ROWS, D)                                # (14, 32) pos buffer
    suit_table = 0.1 * jax.random.normal(key, (S_ROWS, D), jnp.float32)  # nn.Embedding weights
    suit_table = suit_table.at[0].set(0.0)                               # padding_idx=0
    # Packed slab: rows [0, R_ROWS) = rank pos table, rows [R_ROWS, R_ROWS+S_ROWS) = suit table.
    table = jnp.concatenate([rank_table, suit_table], axis=0)            # (19, 32)
    return dict(table=table, rank_table=rank_table, suit_table=suit_table)


# ----------------------------- kernel ------------------------------------
def card_embed_kernel(x_ref, table_ref, out_ref, *, num_rank_rows):
    """Fused (rank-gather + suit-gather + add) for one block of cards.

    x_ref:     (blk, 2) int32   -- [:, 0] = rank, [:, 1] = suit; -1 means padding
    table_ref: (R+S, D) float32 -- packed [rank_table ; suit_table], VMEM-resident
    out_ref:   (blk, D) float32
    """
    total = table_ref.shape[0]
    num_suit_rows = total - num_rank_rows

    idx = x_ref[...] + 1                       # torch does embed(x + 1); padding (-1) -> row 0
    # Clamp each index into its own table's row range so rank can never read suit
    # rows (and vice versa).  In-range inputs are unaffected.
    rank_idx = jnp.clip(idx[:, 0:1], 0, num_rank_rows - 1)                 # (blk, 1) in [0, R)
    suit_idx = jnp.clip(idx[:, 1:2], 0, num_suit_rows - 1) + num_rank_rows  # (blk, 1) in [R, R+S)

    blk = x_ref.shape[0]
    lane = jax.lax.broadcasted_iota(jnp.int32, (blk, total), 1)
    # Disjoint index ranges -> OR of the two one-hots equals their sum, so one
    # select reproduces rank_emb + suit_emb when contracted with the packed table.
    onehot = jnp.where((lane == rank_idx) | (lane == suit_idx),
                       jnp.float32(1.0), jnp.float32(0.0))                 # (blk, R+S)

    out_ref[...] = jnp.dot(onehot, table_ref[...],
                           preferred_element_type=jnp.float32)             # (blk, D)


def card_model_forward(x, params, *, row_block=ROW_BLOCK):
    """x: int32 (B, N, 2) with last dim = [rank, suit]; -1 means padding."""
    Bx, Nx, _ = x.shape
    bn = Bx * Nx
    x_flat = x.reshape(bn, 2).astype(jnp.int32)

    # Pick the row block: large batches use ROW_BLOCK (fills the MXU M dim and
    # gives a multi-step "parallel" grid for megacore); tiny batches round up to
    # a sublane multiple so the whole problem is one grid step.
    blk = row_block if bn >= row_block else max(8, ((bn + 7) // 8) * 8)
    bn_pad = ((bn + blk - 1) // blk) * blk
    if bn_pad != bn:
        x_flat = jnp.pad(x_flat, ((0, bn_pad - bn), (0, 0)), constant_values=-1)

    out_flat = pl.pallas_call(
        functools.partial(card_embed_kernel, num_rank_rows=R_ROWS),
        out_shape=jax.ShapeDtypeStruct((bn_pad, D), jnp.float32),
        grid=(bn_pad // blk,),
        in_specs=[
            pl.BlockSpec((blk, 2), lambda i: (i, 0)),          # card codes, blocked over rows
            pl.BlockSpec((TOTAL_ROWS, D), lambda i: (0, 0)),   # packed table, resident across steps
        ],
        out_specs=pl.BlockSpec((blk, D), lambda i: (i, 0)),
        compiler_params=pltpu.CompilerParams(
            dimension_semantics=("parallel",)),                # shard rows across TCs (v7x)
    )(x_flat, params['table'])

    return out_flat[:bn].reshape(Bx, Nx, D)


# ------------------------- pure-JAX reference ----------------------------
def card_model_reference(x, params):
    rank = x[..., 0]
    suit = x[..., 1]
    return (jnp.take(params['rank_table'], (rank + 1).astype(jnp.int32), axis=0)
            + jnp.take(params['suit_table'], (suit + 1).astype(jnp.int32), axis=0))


def make_inputs(key, b, n):
    kr, ks, km = jax.random.split(key, 3)
    ranks = jax.random.randint(kr, (b, n), 0, MAX_SUIT_LEN)
    suits = jax.random.randint(ks, (b, n), 0, NUM_SUITS)
    pad = jax.random.bernoulli(km, 0.3, (b, n))
    ranks = jnp.where(pad, -1, ranks)
    suits = jnp.where(pad, -1, suits)
    return jnp.stack([ranks, suits], axis=-1).astype(jnp.int32)   # (b, n, 2)


# ------------------------------- main -------------------------------------
if __name__ == "__main__":
    key = jax.random.PRNGKey(0)
    kp, kx, kx2 = jax.random.split(key, 3)

    params = init_params(kp)

    # Small shape matching the module (B=2 hands, N=8 cards).
    x = make_inputs(kx, B, N)
    out = jax.block_until_ready(card_model_forward(x, params))
    ref = card_model_reference(x, params)
    np.testing.assert_allclose(np.asarray(out), np.asarray(ref), rtol=1e-5, atol=1e-5)

    # Larger batch: exercises the row-blocked, multi-step "parallel" grid path.
    x_big = make_inputs(kx2, 80, 8)   # BN = 640 -> 3 grid steps of 256 rows (last padded)
    out_big = jax.block_until_ready(card_model_forward(x_big, params))
    ref_big = card_model_reference(x_big, params)
    np.testing.assert_allclose(np.asarray(out_big), np.asarray(ref_big), rtol=1e-5, atol=1e-5)

    print("KERNEL_OK")
</pallas_src>

<mosaic_0001>
module attributes {stable_mosaic.version = 11 : i64} {
  func.func @card_embed_kernel(%arg0: i32, %arg1: memref<16x2xi32, #tpu.memory_space<vmem>>, %arg2: memref<19x32xf32, #tpu.memory_space<vmem>>, %arg3: memref<16x32xf32, #tpu.memory_space<vmem>>) attributes {dimension_semantics = [#tpu.dimension_semantics<parallel>], iteration_bounds = array<i64: 1>, scalar_prefetch = 0 : i64, scratch_operands = 0 : i64, tpu.core_type = #tpu.core_type<tc>, window_params = [{transform_indices = @transform_0, window_bounds = array<i64: 16, 2>}, {pipeline_mode = #tpu.pipeline_mode<synchronous>, transform_indices = @transform_1, window_bounds = array<i64: 19, 32>}, {transform_indices = @transform_2, window_bounds = array<i64: 16, 32>}]} {
    %c0 = arith.constant 0 : index
    %c0_0 = arith.constant 0 : index
    %0 = vector.load %arg1[%c0, %c0_0] : memref<16x2xi32, #tpu.memory_space<vmem>>, vector<16x2xi32>
    %c1_i32 = arith.constant 1 : i32
    %1 = vector.broadcast %c1_i32 : i32 to vector<16x2xi32>
    %2 = arith.addi %0, %1 : vector<16x2xi32>
    %3 = vector.extract_strided_slice %2 {offsets = [0, 0], sizes = [16, 1], strides = [1, 1]} : vector<16x2xi32> to vector<16x1xi32>
    %c0_i32 = arith.constant 0 : i32
    %c13_i32 = arith.constant 13 : i32
    %4 = vector.broadcast %c0_i32 : i32 to vector<16x1xi32>
    %5 = arith.maxsi %4, %3 : vector<16x1xi32>
    %6 = vector.broadcast %c13_i32 : i32 to vector<16x1xi32>
    %7 = arith.minsi %6, %5 : vector<16x1xi32>
    %8 = vector.extract_strided_slice %2 {offsets = [0, 1], sizes = [16, 1], strides = [1, 1]} : vector<16x2xi32> to vector<16x1xi32>
    %c0_i32_1 = arith.constant 0 : i32
    %c4_i32 = arith.constant 4 : i32
    %9 = vector.broadcast %c0_i32_1 : i32 to vector<16x1xi32>
    %10 = arith.maxsi %9, %8 : vector<16x1xi32>
    %11 = vector.broadcast %c4_i32 : i32 to vector<16x1xi32>
    %12 = arith.minsi %11, %10 : vector<16x1xi32>
    %c14_i32 = arith.constant 14 : i32
    %13 = vector.broadcast %c14_i32 : i32 to vector<16x1xi32>
    %14 = arith.addi %12, %13 : vector<16x1xi32>
    %15 = tpu.iota {dimensions = array<i32: 1>} : vector<16x19xi32>
    %16 = vector.broadcast %7 : vector<16x1xi32> to vector<16x19xi32>
    %17 = arith.cmpi eq, %15, %16 : vector<16x19xi32>
    %18 = vector.broadcast %14 : vector<16x1xi32> to vector<16x19xi32>
    %19 = arith.cmpi eq, %15, %18 : vector<16x19xi32>
    %20 = arith.ori %17, %19 : vector<16x19xi1>
    %cst = arith.constant 1.000000e+00 : f32
    %cst_2 = arith.constant 0.000000e+00 : f32
    %21 = vector.broadcast %cst : f32 to vector<16x19xf32>
    %22 = vector.broadcast %cst_2 : f32 to vector<16x19xf32>
    %23 = arith.select %20, %21, %22 : vector<16x19xi1>, vector<16x19xf32>
    %c0_3 = arith.constant 0 : index
    %c0_4 = arith.constant 0 : index
    %24 = vector.load %arg2[%c0_3, %c0_4] : memref<19x32xf32, #tpu.memory_space<vmem>>, vector<19x32xf32>
    %cst_5 = arith.constant dense<0.000000e+00> : vector<16x32xf32>
    %25 = tpu.matmul %23, %24, %cst_5 {dimension_numbers = #tpu.dot_dimension_numbers<[1], [0], [0], [1], [0, 0, 1, 1], [], []>} : vector<16x19xf32>, vector<19x32xf32>, vector<16x32xf32> -> vector<16x32xf32>
    %c0_6 = arith.constant 0 : index
    %c0_7 = arith.constant 0 : index
    %26 = vector.load %arg3[%c0_6, %c0_7] : memref<16x32xf32, #tpu.memory_space<vmem>>, vector<16x32xf32>
    tpu.vector_store %arg3[%c0_6, %c0_7], %25 {strides = array<i32>} : memref<16x32xf32, #tpu.memory_space<vmem>>, vector<16x32xf32>,
    return
  }
  func.func @transform_0(%arg0: i32) -> (i32, i32) {
    %c0_i32 = arith.constant 0 : i32
    %c0_i32_0 = arith.constant 0 : i32
    return %arg0, %c0_i32 : i32, i32
  }
  func.func @transform_1(%arg0: i32) -> (i32, i32) {
    %c0_i32 = arith.constant 0 : i32
    %c0_i32_0 = arith.constant 0 : i32
    %c0_i32_1 = arith.constant 0 : i32
    return %c0_i32, %c0_i32_0 : i32, i32
  }
  func.func @transform_2(%arg0: i32) -> (i32, i32) {
    %c0_i32 = arith.constant 0 : i32
    %c0_i32_0 = arith.constant 0 : i32
    return %arg0, %c0_i32 : i32, i32
  }
}

</mosaic_0001>

<bundles_post_ra>
// kernel: tpu_custom_call.1
= control target key start
LH: loop header
LB: loop body
LE: loop exit
PB: predicated region body
PF: predicated region fallthrough
CT: control target
= control target key end

     0   :  { %7 = vsyncpa [#allocation3], 0  ;;  %s287_s0 = inlined_call_operand.vmem [shape: s32[16,2], index: 0, kind: input, shape index: {}]   ;;  %s288_s1 = inlined_call_operand.hbm [shape: f32[19,32], index: 1, kind: input, shape index: {}]   ;;  %s289_s2 = inlined_call_operand.hbm [shape: f32[16,32], index: 2, kind: output, shape index: {}]  }
   0x1   :  { %8 = vsyncpa [#allocation4], 0  ;;  %s247_s9 = smov [#allocation2]  }
   0x2   :  { %s16_s10 = sshll.u32 %s247_s9, 4  ;;  %s17_s10 = int_to_ptr.vmem [resolvable:$true] %s16_s10 }
   0x3   :  { %s211_s11 = scalar_lea.vmem %s17_s10, 384  ;;  %p216_p1 = scmp.lt.s32.totalorder %s17_s10, %s17_s10 }
   0x4   :  { %p212_p0 = scmp.ne.s32.totalorder %s17_s10, %s211_s11  ;;  %p217_p2 = scmp.lt.s32.totalorder %s211_s11, %s211_s11 }
   0x6   :  { %p218_p3 = por %p217_p2, %p216_p1 }
   0x8   :  { %p219_p4 = pnand %p218_p3, %p212_p0 }
   0xa   :  { %222 = shalt.err (!%p219_p4)
}
   0xb   :  { %s248_s12 = smov 128   ;;  %s249_s13 = smov 8  }
   0xc   :  { %22 = dma.hbm_to_vmem [thread:$0]  %s288_s1, 384, %s17_s10, [#allocation3], %s248_s12, %s248_s12, %s249_s13  }
   0xd   :  { %243 = dma.done.wait [#allocation3], 384  }
   0xe   :  { %244 = vsyncadd [#allocation3], 4294966912  ;;  %v250_v0 = vmov 0   ;;  %v27_v1 = vld [vmem:[%s287_s0 + $0x8] sm:$0xff]  ;;  %v26_v2 = vld [vmem:[%s287_s0] sm:$0xff]  ;;  %vm76_vm2 = vcmask 1042432   ;;  %v44_v17 = vlaneseq }
   0xf   :  { %201 = vset.pattern.permute.xlu1 %v250_v0  ;;  %199 = vset.pattern.permute.xlu0 %v250_v0  ;;  %v29_v3 = vadd.s32 1, %v27_v1  ;;  %v28_v4 = vadd.s32 1, %v26_v2  ;;  %v68_v5 = vld [vmem:[#allocation2 + $0x10] sm:$0x7]  ;;  %v67_v12 = vld [vmem:[#allocation2 + $0x8] sm:$0xff]  ;;  %v66_v15 = vld [vmem:[#allocation2] sm:$0xff] }
  0x10   :  { %183 = vmatprep.subr.msk.mxu0 %vm76_vm2, %v68_v5  ;;  %v251_v16 = vmov 1   ;;  %v45_v20 = vand.u32 127, %v44_v17  ;;  %vm69_vm12 = vcmask 154624   ;;  %v252_v23 = vmov 0.0   ;;  %s253_s0 = smov [#allocation5]  }
  0x11   :  { %vm32_vm0 = vcmp.gt.s32.totalorder %v29_v3, 0  ;;  %vm30_vm1 = vcmp.gt.s32.totalorder %v28_v4, 0  ;;  %184 = vmatpush3.msk.msra.mxu0 %vm76_vm2, %v68_v5  ;;  %vm155_vm14 = vcmask 261120   ;;  %s163_s1 = sshll.u32 %s253_s0, 4  ;;  %s164_s1 = int_to_ptr.vmem [resolvable:$true] %s163_s1 }
  0x12   :  { %v33_v6 = vsel %vm32_vm0, %v29_v3, 0  ;;  %v31_v7 = vsel %vm30_vm1, %v28_v4, 0  ;;  %185 = vmatprep.subr.mxu0 %v67_v12  ;;  %s223_s20 = scalar_lea.vmem %s164_s1, 256  ;;  %p228_p6 = scmp.lt.s32.totalorder %s164_s1, %s164_s1 }
  0x13   :  { %vm36_vm3 = vcmp.lt.s32.totalorder %v33_v6, 13  ;;  %vm34_vm4 = vcmp.lt.s32.totalorder %v31_v7, 13  ;;  %vm40_vm5 = vcmp.lt.s32.totalorder %v33_v6, 4  ;;  %vm38_vm6 = vcmp.lt.s32.totalorder %v31_v7, 4  ;;  %186 = vmatpush3.msra.mxu0 %v67_v12  ;;  %p224_p5 = scmp.ne.s32.totalorder %s164_s1, %s223_s20  ;;  %p229_p7 = scmp.lt.s32.totalorder %s223_s20, %s223_s20 }
  0x14   :  { %v37_v8 = vsel %vm36_vm3, %v33_v6, 13  ;;  %v35_v9 = vsel %vm34_vm4, %v31_v7, 13  ;;  %v41_v10 = vsel %vm40_vm5, %v33_v6, 4  ;;  %v39_v11 = vsel %vm38_vm6, %v31_v7, 4  ;;  %187 = vmatprep.subr.mxu0 %v66_v15 }
  0x15   :  { %50 = vperm.xlu1 %201, %v37_v8   ;;  %47 = vperm.xlu0 %199, %v35_v9   ;;  %v43_v13 = vadd.s32 14, %v41_v10  ;;  %v42_v14 = vadd.s32 14, %v39_v11  ;;  %p230_p8 = por %p229_p7, %p228_p6 }
  0x16   :  { %188 = vmatpush3.msra.mxu0 %v66_v15 }
  0x17   :  { %p231_p9 = pnand %p230_p8, %p224_p5 }
  0x19   :  { %202 = vset.pattern.permute.xlu1 %v251_v16  ;;  %200 = vset.pattern.permute.xlu0 %v251_v16 }
  0x1a   :  { %58 = vperm.xlu1 %202, %v43_v13   ;;  %55 = vperm.xlu0 %200, %v42_v14  }
  0x90   :  { %v48_v18 = vpop.permute.xlu0 %47  ;;  %v51_v19 = vpop.permute.xlu1 %50 }
  0x91   :  { %vm53_vm7 = vcmp.eq.s32.totalorder %v45_v20, %v51_v19  ;;  %vm52_vm10 = vcmp.eq.s32.totalorder %v45_v20, %v48_v18 }
  0x95   :  { %v59_v21 = vpop.permute.xlu1 %58  ;;  %v56_v22 = vpop.permute.xlu0 %55 }
  0x96   :  { %vm61_vm8 = vcmp.eq.s32.totalorder %v45_v20, %v59_v21  ;;  %vm60_vm9 = vcmp.eq.s32.totalorder %v45_v20, %v56_v22 }
  0x97   :  { %vm63_vm11 = vmor %vm53_vm7, %vm61_vm8 }
  0x98   :  { %vm62_vm13 = vmor %vm52_vm10, %vm60_vm9  ;;  %v65_v24 = vsel %vm63_vm11, 1.0, %v252_v23 }
  0x99   :  { %v64_v25 = vsel %vm62_vm13, 1.0, %v252_v23 }
  0x9a   :  { %189 = vmatprep.mubr.msk.f32.mxu0 %vm69_vm12, %v64_v25 }
  0x9b   :  { %190 = vmatmul.mubr.msk.f32.vlgmr.msra.gmra.mxu0 %vm69_vm12, %v65_v24 }
 0x15b   :  { %v191_v26 = vpop.f32.mrf.mxu0 }
 0x15c   :  { %157 = vst.msk [vmem:[#allocation5 + $0x8] sm:$0xff] %vm155_vm14, %v191_v26 }
 0x15d   :  { %v146_v27 = vpop.f32.mrf.mxu0 }
 0x15e   :  { %156 = vst.msk [vmem:[#allocation5] sm:$0xff] %vm155_vm14, %v146_v27 }
 0x15f   :  { %234 = shalt.err (!%p231_p9)
}
 0x160   :  { %169 = dma.vmem_to_hbm [thread:$0]  %s164_s1, 256, %s289_s2, [#allocation4], %s248_s12, %s248_s12, %s249_s13  }
 0x161   :  { %245 = dma.done.wait [#allocation4], 256  }
 0x162   :  { %246 = vsyncadd [#allocation4], 4294967040 }
 0x163   :  { %173 = vsyncpa [#allocation3], 1 }
 0x164   :  { %174 = vsyncpa [#allocation4], 1 }

</bundles_post_ra>
